<compile_context>
chip_gen: v7x
topology: tpu7x:2x2x1
jax: 0.10.0
libtpu: 0.0.40
codegen_flags: <defaults>
</compile_context>

<pallas_src>
import functools

import jax
import jax.numpy as jnp
from jax.experimental import pallas as pl
from jax.experimental.pallas import tpu as pltpu


def _round_up(n: int, m: int) -> int:
    return ((n + m - 1) // m) * m


def encoder_kernel(x_ref, w_ref, o_ref):
    # Single fused matmul (MXU, f32 accumulation) + ReLU (VPU).
    acc = jnp.dot(x_ref[...], w_ref[...], preferred_element_type=jnp.float32)
    o_ref[...] = jnp.maximum(acc, 0.0)


@functools.partial(jax.jit, static_argnames=("block_b", "compute_dtype"))
def encoder_forward(x, w1_t, w2_t, w3_t, *, block_b=512, compute_dtype=jnp.float32):
    """Forward pass of Encoder.

    x:     [B, input_size]
    w*_t:  transposed nn.Linear weights, i.e. [in_features, out_features],
           so each layer is a plain `x @ W` (== x @ weight.T in PyTorch).
    Returns [B, latent_size] float32.
    """
    B, D = x.shape
    latent = w3_t.shape[1]

    # ---- algebraic weight fold (exactly the same linear map, no biases) ----
    w_fused = ((w1_t.astype(jnp.float32) @ w2_t.astype(jnp.float32))
               @ w3_t.astype(jnp.float32))                     # [D, latent]

    # ---- lane-dense output: pad latent dim up to a multiple of 128 --------
    n_pad = _round_up(max(latent, 128), 128)
    w_pad = jnp.zeros((D, n_pad), jnp.float32).at[:, :latent].set(w_fused)

    # Optional reduced-precision MXU inputs (bf16 in, f32 accumulate).
    # Keep f32 by default for bit-tight validation; flip to jnp.bfloat16 on
    # v6e/v7x to halve DMA bytes (kernel is bandwidth/overhead bound).
    x_c = x.astype(compute_dtype)
    w_c = w_pad.astype(compute_dtype)

    # ---- batch tiling: large tiles amortize per-step pipeline overhead ----
    tb = block_b if B >= block_b else _round_up(B, 8)
    b_pad = _round_up(B, tb)
    if b_pad != B:
        x_c = jnp.pad(x_c, ((0, b_pad - B), (0, 0)))
    grid = (b_pad // tb,)

    out = pl.pallas_call(
        encoder_kernel,
        out_shape=jax.ShapeDtypeStruct((b_pad, n_pad), jnp.float32),
        grid=grid,
        in_specs=[
            # x: tiled over batch.
            pl.BlockSpec((tb, D), lambda i: (i, 0),
                         memory_space=pltpu.MemorySpace.VMEM),
            # fused weight: constant block index -> stays VMEM-resident.
            pl.BlockSpec((D, n_pad), lambda i: (0, 0),
                         memory_space=pltpu.MemorySpace.VMEM),
        ],
        out_specs=pl.BlockSpec((tb, n_pad), lambda i: (i, 0),
                               memory_space=pltpu.MemorySpace.VMEM),
        compiler_params=pltpu.CompilerParams(
            dimension_semantics=("parallel",)),
    )(x_c, w_c)

    # Strip batch padding and the lane padding on the latent dim.
    return out[:B, :latent]


if __name__ == "__main__":
    # Hyper-params implied by the module (args.layers, args.latent_shape).
    batch = 8
    input_size = 32
    layers = (64, 48)
    latent_shape = (4, 4)
    latent_size = latent_shape[0] * latent_shape[1]   # 16

    key = jax.random.PRNGKey(0)
    kx, k1, k2, k3 = jax.random.split(key, 4)

    x = jax.random.normal(kx, (batch, input_size), dtype=jnp.float32)

    # Deterministic synthetic weights (stored transposed: [in, out]).
    w1_t = jax.random.normal(k1, (input_size, layers[0]), dtype=jnp.float32) * 0.1
    w2_t = jax.random.normal(k2, (layers[0], layers[1]), dtype=jnp.float32) * 0.1
    w3_t = jax.random.normal(k3, (layers[1], latent_size), dtype=jnp.float32) * 0.1

    out = encoder_forward(x, w1_t, w2_t, w3_t)
    jax.block_until_ready(out)

    # Reference: the original (unfused) 3-layer forward pass.
    ref = jnp.maximum(((x @ w1_t) @ w2_t) @ w3_t, 0.0)
    assert out.shape == (batch, latent_size)
    assert jnp.allclose(out, ref, atol=1e-5, rtol=1e-4), (
        f"max abs err = {jnp.max(jnp.abs(out - ref))}")

    print("KERNEL_OK")
</pallas_src>

<mosaic_0001>
module attributes {stable_mosaic.version = 11 : i64} {
  func.func @encoder_kernel(%arg0: i32, %arg1: memref<8x32xf32, #tpu.memory_space<vmem>>, %arg2: memref<32x128xf32, #tpu.memory_space<vmem>>, %arg3: memref<8x128xf32, #tpu.memory_space<vmem>>) attributes {dimension_semantics = [#tpu.dimension_semantics<parallel>], iteration_bounds = array<i64: 1>, scalar_prefetch = 0 : i64, scratch_operands = 0 : i64, tpu.core_type = #tpu.core_type<tc>, window_params = [{transform_indices = @transform_0, window_bounds = array<i64: 8, 32>}, {pipeline_mode = #tpu.pipeline_mode<synchronous>, transform_indices = @transform_1, window_bounds = array<i64: 32, 128>}, {transform_indices = @transform_2, window_bounds = array<i64: 8, 128>}]} {
    %c0 = arith.constant 0 : index
    %c0_0 = arith.constant 0 : index
    %0 = vector.load %arg1[%c0, %c0_0] : memref<8x32xf32, #tpu.memory_space<vmem>>, vector<8x32xf32>
    %c0_1 = arith.constant 0 : index
    %c0_2 = arith.constant 0 : index
    %1 = vector.load %arg2[%c0_1, %c0_2] : memref<32x128xf32, #tpu.memory_space<vmem>>, vector<32x128xf32>
    %cst = arith.constant dense<0.000000e+00> : vector<8x128xf32>
    %2 = tpu.matmul %0, %1, %cst {dimension_numbers = #tpu.dot_dimension_numbers<[1], [0], [0], [1], [0, 0, 1, 1], [], []>} : vector<8x32xf32>, vector<32x128xf32>, vector<8x128xf32> -> vector<8x128xf32>
    %cst_3 = arith.constant 0.000000e+00 : f32
    %3 = vector.broadcast %cst_3 : f32 to vector<8x128xf32>
    %4 = arith.maximumf %2, %3 : vector<8x128xf32>
    %c0_4 = arith.constant 0 : index
    %c0_5 = arith.constant 0 : index
    %5 = vector.load %arg3[%c0_4, %c0_5] : memref<8x128xf32, #tpu.memory_space<vmem>>, vector<8x128xf32>
    tpu.vector_store %arg3[%c0_4, %c0_5], %4 {strides = array<i32>} : memref<8x128xf32, #tpu.memory_space<vmem>>, vector<8x128xf32>,
    return
  }
  func.func @transform_0(%arg0: i32) -> (i32, i32) {
    %c0_i32 = arith.constant 0 : i32
    %c0_i32_0 = arith.constant 0 : i32
    return %arg0, %c0_i32 : i32, i32
  }
  func.func @transform_1(%arg0: i32) -> (i32, i32) {
    %c0_i32 = arith.constant 0 : i32
    %c0_i32_0 = arith.constant 0 : i32
    %c0_i32_1 = arith.constant 0 : i32
    return %c0_i32, %c0_i32_0 : i32, i32
  }
  func.func @transform_2(%arg0: i32) -> (i32, i32) {
    %c0_i32 = arith.constant 0 : i32
    %c0_i32_0 = arith.constant 0 : i32
    return %arg0, %c0_i32 : i32, i32
  }
}

</mosaic_0001>

<bundles_post_ra>
// kernel: encoder_forward.1
= control target key start
LH: loop header
LB: loop body
LE: loop exit
PB: predicated region body
PF: predicated region fallthrough
CT: control target
= control target key end

     0   :  { %v158_v3 = vmov 0.0|0.0   ;;  %vm159_vm0 = vmmov 0   ;;  %v160_v6 = vmov 0.0   ;;  %s204_s0 = inlined_call_operand.vmem [shape: f32[8,32], index: 0, kind: input, shape index: {}]   ;;  %s205_s1 = inlined_call_operand.vmem [shape: f32[32,128], index: 1, kind: input, shape index: {}]   ;;  %s206_s2 = inlined_call_operand.hbm [shape: f32[8,128], index: 2, kind: output, shape index: {}]  }
   0x1   :  { %v13_v0 = vld [vmem:[%s205_s1] sm:$0xff]  ;;  %v14_v1 = vld [vmem:[%s205_s1 + $0x8] sm:$0xff]  ;;  %v15_v2 = vld [vmem:[%s205_s1 + $0x10] sm:$0xff]  ;;  %124 = vmatprep.subr.bf16.mxu0 %v158_v3  ;;  %121 = vmatprep.mubr.msk.f32.mxu0 %vm159_vm0, %v160_v6 }
   0x2   :  { %v125_v4 = vpack.c.bf16 %v14_v1, %v13_v0  ;;  %v16_v5 = vld [vmem:[%s205_s1 + $0x18] sm:$0xff] }
   0x3   :  { %7 = vsyncpa [#allocation3], 0  ;;  %v128_v7 = vpack.c.bf16 %v16_v5, %v15_v2  ;;  %v12_v8 = vld [vmem:[%s204_s0] sm:$0xff]  ;;  %vm17_vm1 = vcmask 261120   ;;  %s161_s19 = smov [#allocation2]  }
   0x4   :  { %126 = vmatpush3.bf16.msra.mxu0 %v125_v4  ;;  %s99_s20 = sshll.u32 %s161_s19, 4  ;;  %s100_s20 = int_to_ptr.vmem [resolvable:$true] %s99_s20 }
   0x5   :  { %127 = vmatprep.subr.bf16.mxu0 %v158_v3  ;;  %s134_s1 = scalar_lea.vmem %s100_s20, 128  ;;  %p139_p1 = scmp.lt.s32.totalorder %s100_s20, %s100_s20 }
   0x6   :  { %p135_p0 = scmp.ne.s32.totalorder %s100_s20, %s134_s1  ;;  %p140_p2 = scmp.lt.s32.totalorder %s134_s1, %s134_s1 }
   0x8   :  { %129 = vmatpush3.bf16.msra.mxu0 %v128_v7  ;;  %p141_p3 = por %p140_p2, %p139_p1 }
   0xa   :  { %p142_p4 = pnand %p141_p3, %p135_p0 }
   0xb   :  { %122 = vmatmul.mubr.msk.f32.vlgmr.msra.gmra.mrb[0].mxu0 %vm17_vm1, %v12_v8 }
  0xde   :  { %v87_v9 = vpop.f32.mrb[0].mxu0 }
  0xdf   :  { %v91_v10 = vmax.f32 %v87_v9, 0.0  ;;  %v123_v11 = vpop.f32.mrb[1].mxu0 }
  0xe1   :  { %92 = vst [vmem:[#allocation2] sm:$0xff] %v91_v10 }
  0xe2   :  { %145 = shalt.err (!%p142_p4)
}
  0xe3   :  { %s146_s0 = scalar_lea.hbm %s206_s2, 128 }
  0xe4   :  { %p147_p5 = scmp.ne.s32.totalorder %s206_s2, %s146_s0  ;;  %p150_p6 = scmp.lt.u32.totalorder %s146_s0, %s206_s2 }
  0xe6   :  { %p152_p7 = pnand %p150_p6, %p147_p5 }
  0xe8   :  { %155 = shalt.err (!%p152_p7)
}
  0xe9   :  { %102 = dma.vmem_to_hbm [thread:$0]  %s100_s20, 128, %s206_s2, [#allocation3]  }
  0xea   :  { %156 = dma.done.wait [#allocation3], 128  }
  0xeb   :  { %157 = vsyncadd [#allocation3], 4294967168 }
  0xec   :  { %106 = vsyncpa [#allocation3], 1 }

</bundles_post_ra>
